<compile_context>
chip_gen: v7x
topology: tpu7x:2x2x1
jax: 0.10.0
libtpu: 0.0.40
codegen_flags: <defaults>
</compile_context>

<pallas_src>
import functools
import math

import jax
import jax.numpy as jnp
from jax.experimental import pallas as pl
from jax.experimental.pallas import tpu as pltpu

_MIB = 1024 * 1024


def _vmem_capacity_bytes():
    """Physical VMEM per TensorCore, with conservative fallbacks."""
    try:
        return int(pltpu.get_tpu_info().vmem_capacity_bytes)
    except Exception:
        pass
    try:
        kind = jax.devices()[0].device_kind.lower()
        if "v7" in kind:
            return 64 * _MIB
        return 128 * _MIB  # v5e / v5p / v6e
    except Exception:
        return 64 * _MIB   # conservative default


def _supports_bf16_eup():
    """bf16 transcendentals exist on v6e/v7x only (not v5e)."""
    try:
        kind = jax.devices()[0].device_kind.lower()
        return ("v6" in kind) or ("v7" in kind)
    except Exception:
        return False


def _tile_candidates(extent):
    """Legal tile sizes for a sequence axis, largest first."""
    cands = {extent}  # full extent is always a legal block shape
    for t in (1024, 512, 256, 128, 64, 32, 16, 8):
        if t < extent and extent % t == 0:
            cands.add(t)
    return sorted(cands, reverse=True)


def _pick_head_group(bh, dv):
    """Heads per grid step: pack ~128 output lanes, amortize per-step overhead."""
    target = max(1, 128 // max(1, dv))
    target = min(target, 8, bh)
    for g in range(target, 0, -1):
        if bh % g == 0:
            return g
    return 1


# --------------------------------------------------------------------------
# Kernels
# --------------------------------------------------------------------------
def _attn_weights_kernel(q_ref, k_ref, v_ref, o_ref, w_ref, *,
                         scale, compute_dtype, bf16_exp, approx_recip):
    # q_ref: (G, tq, D)   k_ref: (G, Sk, D)   v_ref: (G, Sk, Dv)
    # o_ref: (G, tq, Dv)  w_ref: (G, tq, Sk)
    # Fold 1/sqrt(D) into q before the matmul (Sq*D muls instead of Sq*Sk).
    q = (q_ref[...] * scale).astype(compute_dtype)
    k = k_ref[...].astype(compute_dtype)
    v = v_ref[...].astype(compute_dtype)

    # QK^T: contract on D, batch over the head-group axis (no k transpose).
    s = jnp.einsum("gqd,gkd->gqk", q, k,
                   preferred_element_type=jnp.float32)  # (G, tq, Sk) f32

    # Numerically stable softmax along the key axis.
    m = jnp.max(s, axis=-1, keepdims=True)
    x = s - m
    if bf16_exp:
        x = x.astype(jnp.bfloat16)  # bf16 EUP on v6e/v7x
    e = jnp.exp(x)
    denom = jnp.sum(e.astype(jnp.float32), axis=-1, keepdims=True)
    if approx_recip:
        p = e.astype(jnp.float32) * pl.reciprocal(denom, approx=True)
    else:
        p = e.astype(jnp.float32) / denom  # exact on the f32 path

    out = jnp.einsum("gqk,gkd->gqd", p.astype(compute_dtype), v,
                     preferred_element_type=jnp.float32)

    o_ref[...] = out.astype(o_ref.dtype)
    w_ref[...] = p.astype(w_ref.dtype)


def _attn_flash_kernel(q_ref, k_ref, v_ref, o_ref, m_sc, l_sc, acc_sc, *,
                       scale, compute_dtype, bf16_exp, approx_recip):
    # q_ref: (G, tq, D)  k_ref/v_ref: (G, tk, D/Dv)  o_ref: (G, tq, Dv)
    # scratch: m_sc/l_sc (G, tq, 1) f32, acc_sc (G, tq, Dv) f32
    ki = pl.program_id(2)

    @pl.when(ki == 0)
    def _():
        m_sc[...] = jnp.full_like(m_sc, -jnp.inf)
        l_sc[...] = jnp.zeros_like(l_sc)
        acc_sc[...] = jnp.zeros_like(acc_sc)

    q = (q_ref[...] * scale).astype(compute_dtype)
    k = k_ref[...].astype(compute_dtype)
    v = v_ref[...].astype(compute_dtype)

    s = jnp.einsum("gqd,gkd->gqk", q, k,
                   preferred_element_type=jnp.float32)  # (G, tq, tk) f32

    m_prev = m_sc[...]
    m_new = jnp.maximum(m_prev, jnp.max(s, axis=-1, keepdims=True))
    alpha = jnp.exp(m_prev - m_new)
    x = s - m_new
    if bf16_exp:
        x = x.astype(jnp.bfloat16)
    p = jnp.exp(x)

    l_sc[...] = alpha * l_sc[...] + jnp.sum(p.astype(jnp.float32),
                                            axis=-1, keepdims=True)
    acc_sc[...] = alpha * acc_sc[...] + jnp.einsum(
        "gqk,gkd->gqd", p.astype(compute_dtype), v,
        preferred_element_type=jnp.float32)
    m_sc[...] = m_new

    @pl.when(ki == pl.num_programs(2) - 1)
    def _():
        if approx_recip:
            inv = pl.reciprocal(l_sc[...], approx=True)
            o_ref[...] = (acc_sc[...] * inv).astype(o_ref.dtype)
        else:
            o_ref[...] = (acc_sc[...] / l_sc[...]).astype(o_ref.dtype)


# --------------------------------------------------------------------------
# Wrapper
# --------------------------------------------------------------------------
def self_attention(q, k, v, mask=None, *, compute_dtype=None,
                   return_weights=True, weights_dtype=None,
                   q_tile=None, kv_tile=None):
    """Scaled dot-product attention matching the PyTorch module's forward.

    q: [..., Sq, D], k: [..., Sk, D], v: [..., Sk, Dv].
    return_weights=True  -> returns [output, attention_weights] (module semantics).
    return_weights=False -> returns only `output`, using a flash-style kernel
                            (no O(Sq*Sk) weights writeback).
    compute_dtype=None -> bf16 MXU inputs with f32 accumulation (fast path);
    pass jnp.float32 for bit-accurate results (exact softmax division).
    On the fast path weights are written as bf16 by default (they only carry
    bf16-level accuracy anyway); pass weights_dtype to override.
    `mask` is ignored (unused in the reference forward); dropout is identity
    (eval mode).
    """
    del mask  # unused in the reference forward
    *lead, sq, d = q.shape
    sk = k.shape[-2]
    dv = v.shape[-1]
    bh = 1
    for x in lead:
        bh *= x

    qf = q.reshape(bh, sq, d)
    kf = k.reshape(bh, sk, d)
    vf = v.reshape(bh, sk, dv)

    if compute_dtype is None:
        compute_dtype = jnp.bfloat16 if q.dtype == jnp.float32 else q.dtype
    compute_dtype = jnp.dtype(compute_dtype)
    fast_path = compute_dtype != jnp.dtype(jnp.float32)

    if weights_dtype is None:
        weights_dtype = jnp.bfloat16 if fast_path else q.dtype
    weights_dtype = jnp.dtype(weights_dtype)

    bf16_exp = fast_path and _supports_bf16_eup()
    approx_recip = fast_path  # exact division on the f32 path

    scale = 1.0 / math.sqrt(float(k.shape[-1]))
    g = _pick_head_group(bh, dv)

    isz = jnp.dtype(q.dtype).itemsize
    osz = isz
    wsz = weights_dtype.itemsize

    vmem_cap = _vmem_capacity_bytes()
    budget = int(0.72 * vmem_cap)  # headroom for compiler-internal scratch

    flops = 2 * bh * sq * sk * (d + dv)
    transcendentals = bh * sq * sk
    io_bytes = (qf.size + kf.size + vf.size) * isz + bh * sq * dv * osz

    q_sem = "arbitrary" if (bh // g) >= 2 else "parallel"

    if return_weights:
        # ------------------------------------------------------------------
        # Weights path: K/V resident across the Sq sweep of each head group.
        # ------------------------------------------------------------------
        def step_bytes(tq):
            blocks = 2 * g * (tq * d * isz            # q (double-buffered)
                              + sk * (d + dv) * isz   # resident K/V
                              + tq * dv * osz         # output tile
                              + tq * sk * wsz)        # weights tile
            interm = 4 * g * tq * sk * 4               # f32 softmax intermediates
            return blocks + interm

        if q_tile is not None:
            tq = q_tile
        else:
            cands = _tile_candidates(sq)
            tq = cands[-1]
            for t in cands:
                if step_bytes(t) <= budget:
                    tq = t
                    break
        assert sq % tq == 0, "q_tile must divide Sq"
        n_q = sq // tq

        vmem_limit = int(min(0.9 * vmem_cap,
                             max(32 * _MIB, 1.5 * step_bytes(tq))))
        cost = pl.CostEstimate(
            flops=int(flops), transcendentals=int(transcendentals),
            bytes_accessed=int(io_bytes + bh * sq * sk * wsz))

        kernel = functools.partial(
            _attn_weights_kernel, scale=scale, compute_dtype=compute_dtype,
            bf16_exp=bf16_exp, approx_recip=approx_recip)

        out_f, w_f = pl.pallas_call(
            kernel,
            out_shape=(
                jax.ShapeDtypeStruct((bh, sq, dv), q.dtype),
                jax.ShapeDtypeStruct((bh, sq, sk), weights_dtype),
            ),
            grid_spec=pltpu.PrefetchScalarGridSpec(
                num_scalar_prefetch=0,
                grid=(bh // g, n_q),
                in_specs=[
                    pl.BlockSpec((g, tq, d), lambda b, qi: (b, qi, 0)),
                    # K/V constant in qi -> stay resident across the Sq sweep.
                    pl.BlockSpec((g, sk, d), lambda b, qi: (b, 0, 0)),
                    pl.BlockSpec((g, sk, dv), lambda b, qi: (b, 0, 0)),
                ],
                out_specs=[
                    pl.BlockSpec((g, tq, dv), lambda b, qi: (b, qi, 0)),
                    pl.BlockSpec((g, tq, sk), lambda b, qi: (b, qi, 0)),
                ],
            ),
            compiler_params=pltpu.CompilerParams(
                dimension_semantics=("parallel", q_sem),
                vmem_limit_bytes=vmem_limit,
            ),
            cost_estimate=cost,
        )(qf, kf, vf)

        out = out_f.reshape(*lead, sq, dv)
        w = w_f.reshape(*lead, sq, sk)
        return [out, w]

    # ----------------------------------------------------------------------
    # Flash path (no weights output): stream K/V in Sk tiles, accumulate.
    # ----------------------------------------------------------------------
    if kv_tile is not None:
        tk = kv_tile
    else:
        tk = sk
        for t in _tile_candidates(sk):
            if t <= 512:
                tk = t
                break
    assert sk % tk == 0, "kv_tile must divide Sk"

    def step_bytes(tq):
        blocks = 2 * g * (tq * d * isz + tk * (d + dv) * isz + tq * dv * osz)
        scratch = g * tq * (2 + dv) * 4
        interm = 4 * g * tq * tk * 4
        return blocks + scratch + interm

    if q_tile is not None:
        tq = q_tile
    else:
        cands = _tile_candidates(sq)
        tq = cands[-1]
        for t in cands:
            if step_bytes(t) <= budget:
                tq = t
                break
    assert sq % tq == 0, "q_tile must divide Sq"
    n_q = sq // tq
    n_k = sk // tk

    vmem_limit = int(min(0.9 * vmem_cap, max(32 * _MIB, 1.5 * step_bytes(tq))))
    cost = pl.CostEstimate(flops=int(flops),
                           transcendentals=int(transcendentals),
                           bytes_accessed=int(io_bytes))

    kernel = functools.partial(
        _attn_flash_kernel, scale=scale, compute_dtype=compute_dtype,
        bf16_exp=bf16_exp, approx_recip=approx_recip)

    out_f = pl.pallas_call(
        kernel,
        out_shape=jax.ShapeDtypeStruct((bh, sq, dv), q.dtype),
        grid_spec=pltpu.PrefetchScalarGridSpec(
            num_scalar_prefetch=0,
            grid=(bh // g, n_q, n_k),
            in_specs=[
                pl.BlockSpec((g, tq, d), lambda b, qi, ki: (b, qi, 0)),
                pl.BlockSpec((g, tk, d), lambda b, qi, ki: (b, ki, 0)),
                pl.BlockSpec((g, tk, dv), lambda b, qi, ki: (b, ki, 0)),
            ],
            out_specs=pl.BlockSpec((g, tq, dv), lambda b, qi, ki: (b, qi, 0)),
            scratch_shapes=[
                pltpu.VMEM((g, tq, 1), jnp.float32),
                pltpu.VMEM((g, tq, 1), jnp.float32),
                pltpu.VMEM((g, tq, dv), jnp.float32),
            ],
        ),
        compiler_params=pltpu.CompilerParams(
            dimension_semantics=("parallel", q_sem, "arbitrary"),
            vmem_limit_bytes=vmem_limit,
        ),
        cost_estimate=cost,
    )(qf, kf, vf)

    return out_f.reshape(*lead, sq, dv)


# --------------------------------------------------------------------------
# Self-test
# --------------------------------------------------------------------------
if __name__ == "__main__":
    def ref_attn(q, k, v):
        logits = jnp.einsum("...qd,...kd->...qk", q, k) / jnp.sqrt(
            jnp.asarray(q.shape[-1], dtype=jnp.float32))
        w = jax.nn.softmax(logits, axis=-1)
        return jnp.einsum("...qk,...kd->...qd", w, v), w

    key = jax.random.PRNGKey(0)
    kq, kk, kv_ = jax.random.split(key, 3)

    B, H, S, D = 2, 2, 8, 32
    q = jax.random.normal(kq, (B, H, S, D), dtype=jnp.float32)
    k = jax.random.normal(kk, (B, H, S, D), dtype=jnp.float32)
    v = jax.random.normal(kv_, (B, H, S, D), dtype=jnp.float32)
    ref_out, ref_w = ref_attn(q, k, v)

    # Exact path (f32 MXU inputs, exact softmax division): tight tolerance.
    out32, w32 = self_attention(q, k, v, compute_dtype=jnp.float32)
    jax.block_until_ready(out32)
    jax.block_until_ready(w32)
    assert jnp.allclose(out32, ref_out, atol=2e-3, rtol=2e-3)
    assert jnp.allclose(w32, ref_w, atol=2e-3, rtol=2e-3)

    # Default fast path (bf16 MXU inputs, f32 acc, bf16 weights writeback).
    out_fast, w_fast = self_attention(q, k, v)
    jax.block_until_ready(out_fast)
    jax.block_until_ready(w_fast)
    assert jnp.allclose(out_fast, ref_out, atol=5e-2, rtol=5e-2)
    assert jnp.allclose(w_fast.astype(jnp.float32), ref_w, atol=5e-2, rtol=5e-2)

    # Flash path (no weights writeback), exact math.
    out_flash = self_attention(q, k, v, compute_dtype=jnp.float32,
                               return_weights=False)
    jax.block_until_ready(out_flash)
    assert jnp.allclose(out_flash, ref_out, atol=2e-3, rtol=2e-3)

    # Larger shape: exercises multi-step kv accumulation in the flash path.
    B2, H2, S2, D2 = 1, 2, 128, 64
    k2q, k2k, k2v = jax.random.split(jax.random.PRNGKey(0), 3)
    q2 = jax.random.normal(k2q, (B2, H2, S2, D2), dtype=jnp.float32)
    k2 = jax.random.normal(k2k, (B2, H2, S2, D2), dtype=jnp.float32)
    v2 = jax.random.normal(k2v, (B2, H2, S2, D2), dtype=jnp.float32)
    ref_out2, ref_w2 = ref_attn(q2, k2, v2)

    out2, w2 = self_attention(q2, k2, v2, compute_dtype=jnp.float32)
    out2_flash = self_attention(q2, k2, v2, compute_dtype=jnp.float32,
                                return_weights=False, kv_tile=32)
    jax.block_until_ready(out2)
    jax.block_until_ready(out2_flash)
    assert jnp.allclose(out2, ref_out2, atol=2e-3, rtol=2e-3)
    assert jnp.allclose(w2, ref_w2, atol=2e-3, rtol=2e-3)
    assert jnp.allclose(out2_flash, ref_out2, atol=2e-3, rtol=2e-3)

    # Default fast path on the larger shape (bf16 exp on v6e/v7x only).
    out2f = self_attention(q2, k2, v2, return_weights=False, kv_tile=32)
    jax.block_until_ready(out2f)
    assert jnp.allclose(out2f, ref_out2, atol=5e-2, rtol=5e-2)

    print("KERNEL_OK")
</pallas_src>

<mosaic_0001>
module attributes {stable_mosaic.version = 11 : i64} {
  func.func @_attn_weights_kernel(%arg0: i32, %arg1: i32, %arg2: memref<4x8x32xf32, #tpu.memory_space<vmem>>, %arg3: memref<4x8x32xf32, #tpu.memory_space<vmem>>, %arg4: memref<4x8x32xf32, #tpu.memory_space<vmem>>, %arg5: memref<4x8x32xf32, #tpu.memory_space<vmem>>, %arg6: memref<4x8x8xf32, #tpu.memory_space<vmem>>) attributes {dimension_semantics = [#tpu.dimension_semantics<parallel>, #tpu.dimension_semantics<parallel>], iteration_bounds = array<i64: 1, 1>, scalar_prefetch = 0 : i64, scratch_operands = 0 : i64, tpu.core_type = #tpu.core_type<tc>, window_params = [{transform_indices = @transform_0, window_bounds = array<i64: 4, 8, 32>}, {transform_indices = @transform_1, window_bounds = array<i64: 4, 8, 32>}, {transform_indices = @transform_2, window_bounds = array<i64: 4, 8, 32>}, {transform_indices = @transform_3, window_bounds = array<i64: 4, 8, 32>}, {transform_indices = @transform_4, window_bounds = array<i64: 4, 8, 8>}]} {
    %c0 = arith.constant 0 : index
    %c0_0 = arith.constant 0 : index
    %c0_1 = arith.constant 0 : index
    %0 = vector.load %arg2[%c0, %c0_0, %c0_1] : memref<4x8x32xf32, #tpu.memory_space<vmem>>, vector<4x8x32xf32>
    %cst = arith.constant 0.176776692 : f32
    %1 = vector.broadcast %cst : f32 to vector<4x8x32xf32>
    %2 = arith.mulf %0, %1 : vector<4x8x32xf32>
    %c0_2 = arith.constant 0 : index
    %c0_3 = arith.constant 0 : index
    %c0_4 = arith.constant 0 : index
    %3 = vector.load %arg3[%c0_2, %c0_3, %c0_4] : memref<4x8x32xf32, #tpu.memory_space<vmem>>, vector<4x8x32xf32>
    %c0_5 = arith.constant 0 : index
    %c0_6 = arith.constant 0 : index
    %c0_7 = arith.constant 0 : index
    %4 = vector.load %arg4[%c0_5, %c0_6, %c0_7] : memref<4x8x32xf32, #tpu.memory_space<vmem>>, vector<4x8x32xf32>
    "tpu.trace_start"() <{level = 10 : i32, message = "gqd,gkd->gqk"}> : () -> ()
    %cst_8 = arith.constant dense<0.000000e+00> : vector<4x8x8xf32>
    %5 = tpu.matmul %2, %3, %cst_8 {dimension_numbers = #tpu.dot_dimension_numbers<[2], [2], [1], [1], [0, 0, 0, 1, 1, 1], [0], [0]>} : vector<4x8x32xf32>, vector<4x8x32xf32>, vector<4x8x8xf32> -> vector<4x8x8xf32>
    "tpu.trace_stop"() : () -> ()
    %cst_9 = arith.constant dense<0xFF800000> : vector<4x8xf32>
    %6 = vector.multi_reduction <maximumf>, %5, %cst_9 [2] : vector<4x8x8xf32> to vector<4x8xf32>
    %7 = vector.shape_cast %6 : vector<4x8xf32> to vector<4x8x1xf32>
    %8 = vector.broadcast %7 : vector<4x8x1xf32> to vector<4x8x8xf32>
    %9 = arith.subf %5, %8 : vector<4x8x8xf32>
    %10 = math.exp %9 : vector<4x8x8xf32>
    %cst_10 = arith.constant dense<0.000000e+00> : vector<4x8xf32>
    %11 = vector.multi_reduction <add>, %10, %cst_10 [2] : vector<4x8x8xf32> to vector<4x8xf32>
    %12 = vector.shape_cast %11 : vector<4x8xf32> to vector<4x8x1xf32>
    %13 = vector.broadcast %12 : vector<4x8x1xf32> to vector<4x8x8xf32>
    %14 = arith.divf %10, %13 : vector<4x8x8xf32>
    "tpu.trace_start"() <{level = 10 : i32, message = "gqk,gkd->gqd"}> : () -> ()
    %cst_11 = arith.constant dense<0.000000e+00> : vector<4x8x32xf32>
    %15 = tpu.matmul %14, %4, %cst_11 {dimension_numbers = #tpu.dot_dimension_numbers<[2], [1], [1], [2], [0, 0, 0, 1, 1, 2], [0], [0]>} : vector<4x8x8xf32>, vector<4x8x32xf32>, vector<4x8x32xf32> -> vector<4x8x32xf32>
    "tpu.trace_stop"() : () -> ()
    %c0_12 = arith.constant 0 : index
    %c0_13 = arith.constant 0 : index
    %c0_14 = arith.constant 0 : index
    %16 = vector.load %arg5[%c0_12, %c0_13, %c0_14] : memref<4x8x32xf32, #tpu.memory_space<vmem>>, vector<4x8x32xf32>
    tpu.vector_store %arg5[%c0_12, %c0_13, %c0_14], %15 {strides = array<i32>} : memref<4x8x32xf32, #tpu.memory_space<vmem>>, vector<4x8x32xf32>,
    %c0_15 = arith.constant 0 : index
    %c0_16 = arith.constant 0 : index
    %c0_17 = arith.constant 0 : index
    %17 = vector.load %arg6[%c0_15, %c0_16, %c0_17] : memref<4x8x8xf32, #tpu.memory_space<vmem>>, vector<4x8x8xf32>
    tpu.vector_store %arg6[%c0_15, %c0_16, %c0_17], %14 {strides = array<i32>} : memref<4x8x8xf32, #tpu.memory_space<vmem>>, vector<4x8x8xf32>,
    return
  }
  func.func @transform_0(%arg0: i32, %arg1: i32) -> (i32, i32, i32) {
    %c0_i32 = arith.constant 0 : i32
    %c0_i32_0 = arith.constant 0 : i32
    return %arg0, %arg1, %c0_i32 : i32, i32, i32
  }
  func.func @transform_1(%arg0: i32, %arg1: i32) -> (i32, i32, i32) {
    %c0_i32 = arith.constant 0 : i32
    %c0_i32_0 = arith.constant 0 : i32
    %c0_i32_1 = arith.constant 0 : i32
    return %arg0, %c0_i32, %c0_i32_0 : i32, i32, i32
  }
  func.func @transform_2(%arg0: i32, %arg1: i32) -> (i32, i32, i32) {
    %c0_i32 = arith.constant 0 : i32
    %c0_i32_0 = arith.constant 0 : i32
    %c0_i32_1 = arith.constant 0 : i32
    return %arg0, %c0_i32, %c0_i32_0 : i32, i32, i32
  }
  func.func @transform_3(%arg0: i32, %arg1: i32) -> (i32, i32, i32) {
    %c0_i32 = arith.constant 0 : i32
    %c0_i32_0 = arith.constant 0 : i32
    return %arg0, %arg1, %c0_i32 : i32, i32, i32
  }
  func.func @transform_4(%arg0: i32, %arg1: i32) -> (i32, i32, i32) {
    %c0_i32 = arith.constant 0 : i32
    %c0_i32_0 = arith.constant 0 : i32
    return %arg0, %arg1, %c0_i32 : i32, i32, i32
  }
}

</mosaic_0001>

<bundles_post_ra>
// kernel: tpu_custom_call.1
= control target key start
LH: loop header
LB: loop body
LE: loop exit
PB: predicated region body
PF: predicated region fallthrough
CT: control target
= control target key end

     0   :  { %10 = vsyncpa [#allocation3], 0  ;;  %s1138_s0 = inlined_call_operand.hbm [shape: f32[4,8,32], index: 0, kind: input, shape index: {}]   ;;  %s1139_s1 = inlined_call_operand.hbm [shape: f32[4,8,32], index: 1, kind: input, shape index: {}]   ;;  %s1140_s2 = inlined_call_operand.hbm [shape: f32[4,8,32], index: 2, kind: input, shape index: {}]   ;;  %s1141_s3 = inlined_call_operand.hbm [shape: f32[4,8,32], index: 3, kind: output, shape index: {0}]   ;;  %s1142_s4 = inlined_call_operand.hbm [shape: f32[4,8,8], index: 4, kind: output, shape index: {1}]  }
   0x1   :  { %11 = vsyncpa [#allocation6], 0 }
   0x2   :  { %12 = vsyncpa [#allocation4], 0 }
   0x3   :  { %13 = vsyncpa [#allocation10], 0  ;;  %s970_s15 = smov [#allocation5]   ;;  %s971_s17 = smov [#allocation2]  }
   0x4   :  { %s31_s16 = sshll.u32 %s970_s15, 4  ;;  %s19_s18 = sshll.u32 %s971_s17, 4  ;;  %s32_s16 = int_to_ptr.vmem [resolvable:$true] %s31_s16  ;;  %s1004_s18 = int_to_ptr.vmem [resolvable:$true] %s19_s18 }
   0x5   :  { %s852_s21 = scalar_lea.hbm %s1139_s1, 512 }
   0x6   :  { %p853_p0 = scmp.ne.s32.totalorder %s1139_s1, %s852_s21  ;;  %p856_p1 = scmp.lt.u32.totalorder %s852_s21, %s1139_s1 }
   0x8   :  { %p858_p2 = pnand %p856_p1, %p853_p0 }
   0xa   :  { %861 = shalt.err (!%p858_p2)
}
   0xb   :  { %s862_s26 = scalar_lea.vmem %s32_s16, 512  ;;  %p867_p4 = scmp.lt.s32.totalorder %s32_s16, %s32_s16 }
   0xc   :  { %p863_p3 = scmp.ne.s32.totalorder %s32_s16, %s862_s26  ;;  %p868_p5 = scmp.lt.s32.totalorder %s862_s26, %s862_s26 }
   0xe   :  { %p869_p6 = por %p868_p5, %p867_p4 }
  0x10   :  { %p870_p7 = pnand %p869_p6, %p863_p3 }
  0x12   :  { %873 = shalt.err (!%p870_p7)
}
  0x13   :  { %s972_s27 = smov 128   ;;  %s973_s28 = smov 8  }
  0x14   :  { %37 = dma.hbm_to_vmem [thread:$0]  %s1139_s1, 512, %s32_s16, [#allocation6], %s972_s27, %s972_s27, %s973_s28  }
  0x15   :  { %s874_s7 = scalar_lea.hbm %s1138_s0, 512 }
  0x16   :  { %p875_p8 = scmp.ne.s32.totalorder %s1138_s0, %s874_s7  ;;  %p878_p9 = scmp.lt.u32.totalorder %s874_s7, %s1138_s0 }
  0x18   :  { %p880_p10 = pnand %p878_p9, %p875_p8 }
  0x1a   :  { %883 = shalt.err (!%p880_p10)
}
  0x1b   :  { %s884_s12 = scalar_lea.vmem %s1004_s18, 512  ;;  %p889_p12 = scmp.lt.s32.totalorder %s1004_s18, %s1004_s18 }
  0x1c   :  { %p885_p11 = scmp.ne.s32.totalorder %s1004_s18, %s884_s12  ;;  %p890_p13 = scmp.lt.s32.totalorder %s884_s12, %s884_s12 }
  0x1e   :  { %p891_p0 = por %p890_p13, %p889_p12 }
  0x20   :  { %p892_p1 = pnand %p891_p0, %p885_p11 }
  0x22   :  { %895 = shalt.err (!%p892_p1)
}
  0x23   :  { %25 = dma.hbm_to_vmem [thread:$0]  %s1138_s0, 512, %s1004_s18, [#allocation3], %s972_s27, %s972_s27, %s973_s28  }
  0x24   :  { %s974_s14 = smov [#allocation7]   ;;  %s896_s19 = scalar_lea.hbm %s1140_s2, 512 }
  0x25   :  { %s43_s15 = sshll.u32 %s974_s14, 4  ;;  %p897_p2 = scmp.ne.s32.totalorder %s1140_s2, %s896_s19  ;;  %s44_s15 = int_to_ptr.vmem [resolvable:$true] %s43_s15 }
  0x26   :  { %p900_p3 = scmp.lt.u32.totalorder %s896_s19, %s1140_s2 }
  0x28   :  { %p902_p4 = pnand %p900_p3, %p897_p2 }
  0x2a   :  { %905 = shalt.err (!%p902_p4)
}
  0x2b   :  { %s906_s24 = scalar_lea.vmem %s44_s15, 512  ;;  %p911_p6 = scmp.lt.s32.totalorder %s44_s15, %s44_s15 }
  0x2c   :  { %p907_p5 = scmp.ne.s32.totalorder %s44_s15, %s906_s24  ;;  %p912_p7 = scmp.lt.s32.totalorder %s906_s24, %s906_s24 }
  0x2e   :  { %p913_p8 = por %p912_p7, %p911_p6 }
  0x30   :  { %p914_p9 = pnand %p913_p8, %p907_p5 }
  0x32   :  { %917 = shalt.err (!%p914_p9)
}
  0x33   :  { %49 = dma.hbm_to_vmem [thread:$0]  %s1140_s2, 512, %s44_s15, [#allocation6], %s972_s27, %s972_s27, %s973_s28  }
  0x34   :  { %962 = dma.done.wait [#allocation3], 512  }
  0x35   :  { %963 = vsyncadd [#allocation3], 4294966784 }
  0x36   :  { %964 = dma.done.wait [#allocation6], 1024  }
  0x37   :  { %965 = vsyncadd [#allocation6], 4294966272  ;;  %v975_v0 = vmov 0.0   ;;  %vm976_vm0 = vmmov 0   ;;  %vm75_vm1 = vcmask 261120   ;;  %v67_v1 = vld [vmem:[#allocation5] sm:$0xff] }
  0x38   :  { %787 = vmatprep.subr.mxu0 %v975_v0  ;;  %789 = vmatprep.mubr.msk.f32.mxu0 %vm976_vm0, %v975_v0  ;;  %v59_v2 = vld [vmem:[#allocation2] sm:$0xff]  ;;  %v68_v3 = vld [vmem:[#allocation5 + $0x8] sm:$0xff]  ;;  %v61_v6 = vld [vmem:[#allocation2 + $0x10] sm:$0xff]  ;;  %vm380_vm2 = vcmask 64512   ;;  %s977_s2 = smov [#allocation9]  }
  0x39   :  { %792 = vmatprep.subr.mxu1 %v975_v0  ;;  %794 = vmatprep.mubr.msk.f32.mxu1 %vm976_vm0, %v975_v0  ;;  %v63_v4 = vmul.f32 0.17677669, %v59_v2  ;;  %v60_v5 = vld [vmem:[#allocation2 + $0x8] sm:$0xff]  ;;  %v69_v7 = vld [vmem:[#allocation5 + $0x10] sm:$0xff]  ;;  %v62_v9 = vld [vmem:[#allocation2 + $0x18] sm:$0xff]  ;;  %s742_s25 = sshll.u32 %s977_s2, 4  ;;  %s743_s25 = int_to_ptr.vmem [resolvable:$true] %s742_s25 }
  0x3a   :  { %788 = vmatpush3.xpose.msk.msra.mxu0 %vm75_vm1, %v67_v1  ;;  %793 = vmatpush3.xpose.msk.msra.mxu1 %vm75_vm1, %v68_v3  ;;  %v64_v8 = vmul.f32 0.17677669, %v60_v5  ;;  %v70_v10 = vld [vmem:[#allocation5 + $0x18] sm:$0xff]  ;;  %v65_v11 = vmul.f32 0.17677669, %v61_v6  ;;  %v71_v45 = vld [vmem:[#allocation7] sm:$0xff]  ;;  %p923_p11 = scmp.lt.s32.totalorder %s743_s25, %s743_s25 }
  0x3b   :  { %797 = vmatprep.subr.mxu0 %v975_v0  ;;  %802 = vmatprep.subr.mxu1 %v975_v0  ;;  %v66_v12 = vmul.f32 0.17677669, %v62_v9  ;;  %v72_v46 = vld [vmem:[#allocation7 + $0x8] sm:$0xff]  ;;  %v73_v53 = vld [vmem:[#allocation7 + $0x10] sm:$0xff]  ;;  %v74_v57 = vld [vmem:[#allocation7 + $0x18] sm:$0xff]  ;;  %s918_s26 = scalar_lea.vmem %s743_s25, 512 }
  0x3c   :  { %p919_p10 = scmp.ne.s32.totalorder %s743_s25, %s918_s26  ;;  %p924_p12 = scmp.lt.s32.totalorder %s918_s26, %s918_s26 }
  0x3d   :  { %790 = vmatmul.mubr.msk.f32.vlgmr.msra.gmra.mrb[0].mxu0 %vm75_vm1, %v63_v4  ;;  %795 = vmatmul.mubr.msk.f32.vlgmr.msra.gmra.mrb[0].mxu1 %vm75_vm1, %v64_v8 }
  0x3e   :  { %798 = vmatpush3.xpose.msk.msra.mxu0 %vm75_vm1, %v69_v7  ;;  %799 = vmatprep.mubr.msk.f32.mxu0 %vm976_vm0, %v975_v0  ;;  %p925_p13 = por %p924_p12, %p923_p11 }
  0x3f   :  { %803 = vmatpush3.xpose.msk.msra.mxu1 %vm75_vm1, %v70_v10  ;;  %804 = vmatprep.mubr.msk.f32.mxu1 %vm976_vm0, %v975_v0 }
  0x40   :  { %807 = vmatprep.subr.mxu0 %v975_v0  ;;  %812 = vmatprep.subr.mxu1 %v975_v0  ;;  %p926_p0 = pnand %p925_p13, %p919_p10 }
  0x41   :  { %800 = vmatmul.mubr.msk.f32.vlgmr.msra.gmra.mrb[2].mxu0 %vm75_vm1, %v65_v11 }
  0x42   :  { %805 = vmatmul.mubr.msk.f32.vlgmr.msra.gmra.mrb[2].mxu1 %vm75_vm1, %v66_v12  ;;  %809 = vmatprep.mubr.msk.f32.mxu0 %vm976_vm0, %v975_v0 }
  0x43   :  { %814 = vmatprep.mubr.msk.f32.mxu1 %vm976_vm0, %v975_v0  ;;  %808 = vmatpush3.msra.mxu0 %v71_v45 }
  0x44   :  { %817 = vmatprep.subr.mxu0 %v975_v0  ;;  %813 = vmatpush3.msra.mxu1 %v72_v46 }
  0x45   :  { %822 = vmatprep.subr.mxu1 %v975_v0 }
 0x110   :  { %v148_v13 = vpop.f32.mrb[0].mxu0  ;;  %v224_v14 = vpop.f32.mrb[0].mxu1 }
 0x111   :  { %v791_v15 = vpop.f32.mrb[1].mxu0  ;;  %v381_v16 = vsel %vm380_vm2, %v148_v13, -inf  ;;  %v796_v17 = vpop.f32.mrb[1].mxu1  ;;  %v384_v18 = vsel %vm380_vm2, %v224_v14, -inf }
 0x112   :  { %382 = vmax.xlane.f32.xlu0 %v381_v16 }
 0x114   :  { %v300_v19 = vpop.f32.mrb[2].mxu0 }
 0x115   :  { %v801_v20 = vpop.f32.mrb[3].mxu0  ;;  %v387_v21 = vsel %vm380_vm2, %v300_v19, -inf  ;;  %v376_v22 = vpop.f32.mrb[2].mxu1 }
 0x116   :  { %385 = vmax.xlane.f32.xlu0 %v384_v18  ;;  %388 = vmax.xlane.f32.xlu1 %v387_v21  ;;  %v806_v23 = vpop.f32.mrb[3].mxu1  ;;  %v390_v24 = vsel %vm380_vm2, %v376_v22, -inf }
 0x11a   :  { %391 = vmax.xlane.f32.xlu1 %v390_v24 }
 0x19f   :  { %v383_v25 = vpop.xlane.xlu0 %382 }
 0x1a0   :  { %v393_v26 = vsub.f32 %v148_v13, %v383_v25 }
 0x1a2   :  { %v397_v27 = vmul.f32 1.442695, %v393_v26 }
 0x1a3   :  { %v386_v28 = vpop.xlane.xlu0 %385  ;;  %v389_v29 = vpop.xlane.xlu1 %388 }
 0x1a4   :  { %836 = vpow2.f32 %v397_v27  ;;  %v394_v30 = vsub.f32 %v224_v14, %v386_v28  ;;  %v395_v31 = vsub.f32 %v300_v19, %v389_v29 }
 0x1a6   :  { %v399_v32 = vmul.f32 1.442695, %v394_v30  ;;  %v401_v33 = vmul.f32 1.442695, %v395_v31 }
 0x1a7   :  { %v392_v34 = vpop.xlane.xlu1 %391 }
 0x1a8   :  { %838 = vpow2.f32 %v399_v32  ;;  %v396_v35 = vsub.f32 %v376_v22, %v392_v34 }
 0x1a9   :  { %840 = vpow2.f32 %v401_v33 }
 0x1aa   :  { %v403_v36 = vmul.f32 1.442695, %v396_v35 }
 0x1ac   :  { %842 = vpow2.f32 %v403_v36 }
 0x1ae   :  { %v837_v37 = vpop.eup %836 }
 0x1af   :  { %v405_v38 = vsel %vm380_vm2, %v837_v37, 0.0 }
 0x1b0   :  { %406 = vadd.xlane.f32.xlu0 %v405_v38 }
 0x1b2   :  { %v839_v39 = vpop.eup %838 }
 0x1b3   :  { %v841_v40 = vpop.eup %840  ;;  %v408_v41 = vsel %vm380_vm2, %v839_v39, 0.0 }
 0x1b4   :  { %409 = vadd.xlane.f32.xlu1 %v408_v41  ;;  %v411_v42 = vsel %vm380_vm2, %v841_v40, 0.0 }
 0x1b5   :  { %412 = vadd.xlane.f32.xlu0 %v411_v42 }
 0x1b6   :  { %v843_v43 = vpop.eup %842 }
 0x1b7   :  { %v414_v44 = vsel %vm380_vm2, %v843_v43, 0.0 }
 0x1b8   :  { %415 = vadd.xlane.f32.xlu1 %v414_v44 }
 0x23d   :  { %v407_v47 = vpop.xlane.xlu0 %406 }
 0x23e   :  { %844 = vrcp.f32 %v407_v47 }
 0x241   :  { %v410_v48 = vpop.xlane.xlu1 %409 }
 0x242   :  { %v413_v49 = vpop.xlane.xlu0 %412  ;;  %846 = vrcp.f32 %v410_v48 }
 0x243   :  { %848 = vrcp.f32 %v413_v49 }
 0x245   :  { %v416_v50 = vpop.xlane.xlu1 %415 }
 0x246   :  { %850 = vrcp.f32 %v416_v50 }
 0x248   :  { %v845_v51 = vpop.eup %844 }
 0x249   :  { %v418_v52 = vmul.f32 %v845_v51, %v837_v37 }
 0x24b   :  { %721 = vst.msk [vmem:[#allocation9] sm:$0xff] %vm380_vm2, %v418_v52  ;;  %810 = vmatmul.mubr.msk.f32.vlgmr.msra.gmra.mrb[4].mxu0 %vm380_vm2, %v418_v52 }
 0x24c   :  { %v847_v54 = vpop.eup %846  ;;  %818 = vmatpush3.msra.mxu0 %v73_v53  ;;  %819 = vmatprep.mubr.msk.f32.mxu0 %vm976_vm0, %v975_v0 }
 0x24d   :  { %v849_v55 = vpop.eup %848  ;;  %v420_v56 = vmul.f32 %v847_v54, %v839_v39 }
 0x24e   :  { %v422_v58 = vmul.f32 %v849_v55, %v841_v40 }
 0x24f   :  { %722 = vst.msk [vmem:[#allocation9 + $0x8] sm:$0xff] %vm380_vm2, %v420_v56  ;;  %815 = vmatmul.mubr.msk.f32.vlgmr.msra.gmra.mrb[4].mxu1 %vm380_vm2, %v420_v56 }
 0x250   :  { %v851_v59 = vpop.eup %850  ;;  %723 = vst.msk [vmem:[#allocation9 + $0x10] sm:$0xff] %vm380_vm2, %v422_v58  ;;  %820 = vmatmul.mubr.msk.f32.vlgmr.msra.gmra.mrb[6].mxu0 %vm380_vm2, %v422_v58  ;;  %823 = vmatpush3.msra.mxu1 %v74_v57 }
 0x251   :  { %v424_v60 = vmul.f32 %v851_v59, %v843_v43  ;;  %824 = vmatprep.mubr.msk.f32.mxu1 %vm976_vm0, %v975_v0 }
 0x253   :  { %724 = vst.msk [vmem:[#allocation9 + $0x18] sm:$0xff] %vm380_vm2, %v424_v60  ;;  %825 = vmatmul.mubr.msk.f32.vlgmr.msra.gmra.mrb[6].mxu1 %vm380_vm2, %v424_v60 }
 0x254   :  { %929 = shalt.err (!%p926_p0)
}
 0x255   :  { %s930_s5 = scalar_lea.hbm %s1142_s4, 512 }
 0x256   :  { %p931_p1 = scmp.ne.s32.totalorder %s1142_s4, %s930_s5  ;;  %p934_p2 = scmp.lt.u32.totalorder %s930_s5, %s1142_s4 }
 0x258   :  { %p936_p3 = pnand %p934_p2, %p931_p1 }
 0x25a   :  { %939 = shalt.err (!%p936_p3)
}
 0x25b   :  { %748 = dma.vmem_to_hbm [thread:$0]  %s743_s25, 512, %s1142_s4, [#allocation10], %s972_s27, %s972_s27, %s973_s28  }
 0x25c   :  { %s978_s12 = smov [#allocation8]  }
 0x25d   :  { %s730_s1 = sshll.u32 %s978_s12, 4  ;;  %s731_s1 = int_to_ptr.vmem [resolvable:$true] %s730_s1 }
 0x25e   :  { %s940_s4 = scalar_lea.vmem %s731_s1, 512  ;;  %p945_p5 = scmp.lt.s32.totalorder %s731_s1, %s731_s1 }
 0x25f   :  { %p941_p4 = scmp.ne.s32.totalorder %s731_s1, %s940_s4  ;;  %p946_p6 = scmp.lt.s32.totalorder %s940_s4, %s940_s4 }
 0x261   :  { %p947_p7 = por %p946_p6, %p945_p5 }
 0x263   :  { %p948_p8 = pnand %p947_p7, %p941_p4 }
 0x31e   :  { %v494_v61 = vpop.f32.mrb[4].mxu0 }
 0x31f   :  { %717 = vst.msk [vmem:[#allocation8] sm:$0xff] %vm75_vm1, %v494_v61  ;;  %v811_v62 = vpop.f32.mrb[5].mxu0 }
 0x322   :  { %v567_v63 = vpop.f32.mrb[4].mxu1 }
 0x323   :  { %718 = vst.msk [vmem:[#allocation8 + $0x8] sm:$0xff] %vm75_vm1, %v567_v63  ;;  %v640_v0 = vpop.f32.mrb[6].mxu0  ;;  %v816_v1 = vpop.f32.mrb[5].mxu1 }
 0x324   :  { %719 = vst.msk [vmem:[#allocation8 + $0x10] sm:$0xff] %vm75_vm1, %v640_v0  ;;  %v821_v2 = vpop.f32.mrb[7].mxu0 }
 0x326   :  { %v713_v3 = vpop.f32.mrb[6].mxu1 }
 0x327   :  { %720 = vst.msk [vmem:[#allocation8 + $0x18] sm:$0xff] %vm75_vm1, %v713_v3  ;;  %v826_v4 = vpop.f32.mrb[7].mxu1 }
 0x328   :  { %951 = shalt.err (!%p948_p8)
}
 0x329   :  { %s952_s15 = scalar_lea.hbm %s1141_s3, 512 }
 0x32a   :  { %p953_p9 = scmp.ne.s32.totalorder %s1141_s3, %s952_s15  ;;  %p956_p10 = scmp.lt.u32.totalorder %s952_s15, %s1141_s3 }
 0x32c   :  { %p958_p11 = pnand %p956_p10, %p953_p9 }
 0x32e   :  { %961 = shalt.err (!%p958_p11)
}
 0x32f   :  { %736 = dma.vmem_to_hbm [thread:$0]  %s731_s1, 512, %s1141_s3, [#allocation4], %s972_s27, %s972_s27, %s973_s28  }
 0x330   :  { %966 = dma.done.wait [#allocation4], 512  }
 0x331   :  { %967 = vsyncadd [#allocation4], 4294966784 }
 0x332   :  { %968 = dma.done.wait [#allocation10], 512  }
 0x333   :  { %969 = vsyncadd [#allocation10], 4294966784 }
 0x334   :  { %755 = vsyncpa [#allocation3], 1 }
 0x335   :  { %756 = vsyncpa [#allocation6], 1 }
 0x336   :  { %757 = vsyncpa [#allocation4], 1 }
 0x337   :  { %758 = vsyncpa [#allocation10], 1 }

</bundles_post_ra>
